<compile_context>
chip_gen: v6e
topology: v6e:2x2x1
jax: 0.10.0
libtpu: 0.0.40
codegen_flags: <defaults>
</compile_context>

<pallas_src>
import math

import jax
import jax.numpy as jnp
from jax.experimental import pallas as pl
from jax.experimental.pallas import tpu as pltpu

EPS = 1e-5


def _round_up(x, m):
    return (x + m - 1) // m * m


def _bn_scale_bias(gamma, beta, mean, var):
    scale = gamma / jnp.sqrt(var + EPS)
    return scale, beta - mean * scale


def _fuse_taps(channels, compute_dtype, split_override):
    """Fused (Cout, 3*C) matmul vs three accumulating (Cout, C) dots.

    Fused fills the MXU's deep contraction better for small C but needs a sublane
    concatenate (a real copy).  Split when C >= 256 (VMEM/vreg pressure, contraction
    already deep) or when the concat would be packed-dtype unaligned on sublanes."""
    if split_override is not None:
        return not split_override
    packing = 4 // jnp.dtype(compute_dtype).itemsize
    return (channels < 256) and (channels % (8 * packing) == 0)


def _physical_vmem_bytes():
    # Trace-time hardware query; fall back to the smallest per-TC VMEM (v7x: 64 MiB).
    try:
        return int(pltpu.get_tpu_info().vmem_capacity_bytes)
    except Exception:
        return 64 * 1024 * 1024


def _make_basic_block_kernel(Cin, Cout, downsample, im2col, fused1, fused2):
    n1 = 1 if fused1 else 3
    n2 = 1 if fused2 else 3

    def kernel(*refs):
        it = iter(refs)
        x_ref, nf_ref, nl_ref = next(it), next(it), next(it)
        w1_refs = [next(it) for _ in range(n1)]
        b1_ref = next(it)
        w2_refs = [next(it) for _ in range(n2)]
        b2_ref = next(it)
        w3_ref = next(it) if downsample else None
        o_ref = next(it)

        nf = nf_ref[...]   # (1, lt): 0 at each segment's first lane (left pad / batch edge)
        nl = nl_ref[...]   # (1, lt): 0 at each segment's last valid lane (right pad)

        # ---- conv1 + bn1 + relu ----
        if im2col:
            # stride > 1: the 3 taps were im2col'd in the wrapper -> one fused MXU matmul
            h1 = jnp.dot(w1_refs[0][...], x_ref[...], preferred_element_type=jnp.float32)
        else:
            # stride == 1: build the 3 taps in-register from the raw (Cin, lt) block
            x = x_ref[...]
            lanes = x.shape[-1]
            x_l = pltpu.roll(x, shift=1, axis=1) * nf
            x_r = pltpu.roll(x, shift=lanes - 1, axis=1) * nl
            if fused1:
                taps1 = jnp.concatenate([x_l, x, x_r], axis=0)          # (3*Cin, lt)
                h1 = jnp.dot(w1_refs[0][...], taps1, preferred_element_type=jnp.float32)
            else:
                h1 = jnp.dot(w1_refs[1][...], x, preferred_element_type=jnp.float32)
                h1 += jnp.dot(w1_refs[0][...], x_l, preferred_element_type=jnp.float32)
                h1 += jnp.dot(w1_refs[2][...], x_r, preferred_element_type=jnp.float32)
        h1 = jnp.maximum(h1 + b1_ref[...], 0.0)                         # (Cout, lt) f32

        # ---- conv2 + bn2 (taps rebuilt in compute dtype: halves roll/VPU/concat traffic) ----
        h1c = h1.astype(x_ref.dtype)
        lanes = h1c.shape[-1]
        left = pltpu.roll(h1c, shift=1, axis=1) * nf
        right = pltpu.roll(h1c, shift=lanes - 1, axis=1) * nl
        if fused2:
            taps2 = jnp.concatenate([left, h1c, right], axis=0)         # (3*Cout, lt)
            out = jnp.dot(w2_refs[0][...], taps2, preferred_element_type=jnp.float32)
        else:
            out = jnp.dot(w2_refs[1][...], h1c, preferred_element_type=jnp.float32)
            out += jnp.dot(w2_refs[0][...], left, preferred_element_type=jnp.float32)
            out += jnp.dot(w2_refs[2][...], right, preferred_element_type=jnp.float32)
        out = out + b2_ref[...]                                         # bn2 bias (+ folded bn3 bias)

        # ---- shortcut ----
        # im2col: the center-tap rows are exactly x[:, ::stride] (what the k=1 conv3 reads).
        x_sc = x_ref[Cin:2 * Cin, :] if im2col else x_ref[...]
        if downsample:
            out = out + jnp.dot(w3_ref[...], x_sc, preferred_element_type=jnp.float32)
        else:
            # NOTE: identity residual is added in compute dtype (bf16-rounded vs f32 ref).
            out = out + x_sc.astype(jnp.float32)

        o_ref[...] = jnp.maximum(out, 0.0).astype(o_ref.dtype)

    return kernel


def basic_block_forward(x_ncl, params, stride, *, compute_dtype=jnp.bfloat16,
                        out_dtype=jnp.float32, target_lanes=4096, split_taps=None):
    """x_ncl: (N, Cin, L) float32. Returns (N, Cout, L_out). Eval-mode BatchNorm."""
    N, Cin, L = x_ncl.shape
    Cout = params["w1"].shape[0]
    downsample = (stride > 1) or (Cin != Cout)
    L_out = (L - 1) // stride + 1                       # k=3, pad=1
    im2col = stride > 1                                 # stride==1 builds conv1 taps in-kernel
    fused1 = True if im2col else _fuse_taps(Cin, compute_dtype, split_taps)
    fused2 = _fuse_taps(Cout, compute_dtype, split_taps)

    cbytes = int(jnp.dtype(compute_dtype).itemsize)
    obytes = int(jnp.dtype(out_dtype).itemsize)

    # ---- fold eval-mode BN into conv weights (scale) + per-channel bias ----
    s1, b1 = _bn_scale_bias(params["g1"], params["be1"], params["m1"], params["v1"])
    s2, b2 = _bn_scale_bias(params["g2"], params["be2"], params["m2"], params["v2"])
    w1s = params["w1"] * s1[:, None, None]              # (Cout, Cin, 3); tap k hits x[l*stride-1+k]
    w2s = params["w2"] * s2[:, None, None]              # (Cout, Cout, 3)
    if fused1:
        w1_ops = [jnp.transpose(w1s, (0, 2, 1)).reshape(Cout, 3 * Cin).astype(compute_dtype)]
    else:
        w1_ops = [w1s[:, :, k].astype(compute_dtype) for k in range(3)]   # [left, center, right]
    if fused2:
        w2_ops = [jnp.transpose(w2s, (0, 2, 1)).reshape(Cout, 3 * Cout).astype(compute_dtype)]
    else:
        w2_ops = [w2s[:, :, k].astype(compute_dtype) for k in range(3)]
    b1c = b1.reshape(Cout, 1).astype(jnp.float32)
    if downsample:
        s3, b3 = _bn_scale_bias(params["g3"], params["be3"], params["m3"], params["v3"])
        w3f = (params["w3"][:, :, 0] * s3[:, None]).astype(compute_dtype)  # (Cout, Cin)
        b2c = (b2 + b3).reshape(Cout, 1).astype(jnp.float32)               # fold bn3 bias into bn2's
    else:
        b2c = b2.reshape(Cout, 1).astype(jnp.float32)

    # ---- lane tiling: VMEM-budgeted, multiples of 128 (lane-dense stores) ----
    x_rows = 3 * Cin if im2col else Cin
    per_lane = (2 * x_rows * cbytes            # input block (double-buffered)
                + 2 * 2 * 2 * cbytes           # the two (1, lt) edge masks
                + 2 * Cout * obytes            # output block (double-buffered)
                + 2 * Cout * 4                 # h1 / accumulator in f32
                + 3 * Cout * cbytes)           # h1c + rolled left/right taps
    if fused2:
        per_lane += 3 * Cout * cbytes          # conv2 tap concatenate
    if not im2col:
        per_lane += 2 * Cin * cbytes           # rolled conv1 taps
        if fused1:
            per_lane += 3 * Cin * cbytes       # conv1 tap concatenate
    fixed = 2 * cbytes * (3 * Cin * Cout + 3 * Cout * Cout
                          + (Cin * Cout if downsample else 0)) + 4 * Cout * 4

    phys = _physical_vmem_bytes()              # 64 MiB/TC on v7x, 128 MiB on v5e/v6e
    vmem_limit = min(int(phys * 0.85), 112 * 1024 * 1024)
    work_budget = int(phys * 0.65)             # leave headroom for compiler scratch/spills
    lane_cap = max(128, (max(work_budget - fixed, 0) // per_lane) // 128 * 128)
    eff_target = max(128, min(target_lanes, lane_cap))

    R0 = N * L_out
    single = _round_up(R0, 128)
    if single <= eff_target:
        seg, lt = L_out, single                # one grid step covers the whole batch
    else:
        lcm = L_out * 128 // math.gcd(L_out, 128)
        if lcm <= eff_target:
            seg, lt = L_out, lcm               # tile edges land exactly on sample boundaries
        else:
            # lcm blowup guard: pad every sample's segment up to a multiple of 128 instead
            # of letting lt balloon to lcm(L_out, 128) (busts VMEM, especially on v7x).
            seg = _round_up(L_out, 128)
            lt = seg   # TODO(synk): tiles shorter than one segment would need halo exchange
        while lt * 2 <= eff_target:
            lt *= 2
    R = N * seg
    r_pad = _round_up(R, lt)

    # ---- build the lane-major activation slab (cast to compute dtype FIRST) ----
    x_c = x_ncl.astype(compute_dtype)
    if im2col:
        xp = jnp.pad(x_c, ((0, 0), (0, 0), (1, 1)))      # (N, Cin, L+2)
        span = stride * (L_out - 1) + 1
        taps = jnp.stack([xp[:, :, k:k + span:stride] for k in range(3)], axis=0)
        slab = jnp.transpose(taps, (0, 2, 1, 3)).reshape(3 * Cin, N, L_out)
    else:
        slab = jnp.transpose(x_c, (1, 0, 2))             # (Cin, N, L_out)
    if seg > L_out:
        slab = jnp.pad(slab, ((0, 0), (0, 0), (0, seg - L_out)))
    slab = slab.reshape(x_rows, R)
    slab = jnp.pad(slab, ((0, 0), (0, r_pad - R)))

    # segment-edge masks, precomputed once (identical for every tile because tile edges
    # align with segment boundaries): 0 where the conv's pad=1 zero / batch boundary sits.
    pos = jnp.arange(lt, dtype=jnp.int32)
    not_first = (pos % seg != 0).astype(compute_dtype).reshape(1, lt)
    not_last = (pos % seg != L_out - 1).astype(compute_dtype).reshape(1, lt)

    const = lambda shape: pl.BlockSpec(shape, lambda i: (0, 0))
    in_specs = [pl.BlockSpec((x_rows, lt), lambda i: (0, i)),
                const((1, lt)), const((1, lt))]
    operands = [slab, not_first, not_last]
    in_specs += [const(w.shape) for w in w1_ops] + [const((Cout, 1))]
    operands += w1_ops + [b1c]
    in_specs += [const(w.shape) for w in w2_ops] + [const((Cout, 1))]
    operands += w2_ops + [b2c]
    if downsample:
        in_specs.append(const((Cout, Cin)))
        operands.append(w3f)

    out = pl.pallas_call(
        _make_basic_block_kernel(Cin, Cout, downsample, im2col, fused1, fused2),
        out_shape=jax.ShapeDtypeStruct((Cout, r_pad), out_dtype),
        grid=(r_pad // lt,),
        in_specs=in_specs,
        out_specs=pl.BlockSpec((Cout, lt), lambda i: (0, i)),
        compiler_params=pltpu.CompilerParams(
            dimension_semantics=("parallel",),   # independent tiles; v7x can use both TCs
            vmem_limit_bytes=vmem_limit),
    )(*operands)

    # Lane columns beyond the valid data contain junk and are sliced away here.
    # TODO(synk): when chaining blocks, keep the lane-major (Cout, N*seg) layout (zeroing the
    # junk lanes) and bf16 output instead of transposing back to (N, Cout, L_out) every call.
    out = out[:, :R].reshape(Cout, N, seg)[:, :, :L_out]
    return jnp.transpose(out, (1, 0, 2))


# ---------------------------- pure-JAX reference ----------------------------
def basic_block_reference(x, params, stride):
    def conv1d(x, w, s, pad):
        return jax.lax.conv_general_dilated(
            x, w, window_strides=(s,), padding=[(pad, pad)],
            dimension_numbers=("NCH", "OIH", "NCH"))

    def bn(x, g, b, m, v):
        return ((x - m[None, :, None]) / jnp.sqrt(v[None, :, None] + EPS)
                * g[None, :, None] + b[None, :, None])

    Cin = x.shape[1]
    Cout = params["w1"].shape[0]
    downsample = (stride > 1) or (Cin != Cout)

    out = jax.nn.relu(bn(conv1d(x, params["w1"], stride, 1),
                         params["g1"], params["be1"], params["m1"], params["v1"]))
    out = bn(conv1d(out, params["w2"], 1, 1),
             params["g2"], params["be2"], params["m2"], params["v2"])
    if downsample:
        residual = bn(conv1d(x, params["w3"], stride, 0),
                      params["g3"], params["be3"], params["m3"], params["v3"])
    else:
        residual = x
    return jax.nn.relu(out + residual)


def init_params(key, in_channels, out_channels, downsample):
    ks = jax.random.split(key, 16)

    def bn_params(k):
        k1, k2, k3, k4 = jax.random.split(k, 4)
        return (1.0 + 0.1 * jax.random.normal(k1, (out_channels,), jnp.float32),
                0.1 * jax.random.normal(k2, (out_channels,), jnp.float32),
                0.1 * jax.random.normal(k3, (out_channels,), jnp.float32),
                jax.random.uniform(k4, (out_channels,), jnp.float32, 0.5, 1.5))

    p = {}
    p["w1"] = 0.2 * jax.random.normal(ks[0], (out_channels, in_channels, 3), jnp.float32)
    p["g1"], p["be1"], p["m1"], p["v1"] = bn_params(ks[1])
    p["w2"] = 0.2 * jax.random.normal(ks[2], (out_channels, out_channels, 3), jnp.float32)
    p["g2"], p["be2"], p["m2"], p["v2"] = bn_params(ks[3])
    if downsample:
        p["w3"] = 0.2 * jax.random.normal(ks[4], (out_channels, in_channels, 1), jnp.float32)
        p["g3"], p["be3"], p["m3"], p["v3"] = bn_params(ks[5])
    return p


if __name__ == "__main__":
    key = jax.random.PRNGKey(0)
    kx1, kx2, kx3, kp1, kp2, kp3 = jax.random.split(key, 6)

    # --- case 1: downsample shortcut (stride=2, Cin != Cout) -> wrapper im2col path ---
    N, Cin, Cout, L, stride = 2, 4, 8, 16, 2
    x = jax.random.normal(kx1, (N, Cin, L), jnp.float32)
    p1 = init_params(kp1, Cin, Cout, downsample=True)
    ref1 = basic_block_reference(x, p1, stride)

    o1_f32 = jax.block_until_ready(
        basic_block_forward(x, p1, stride, compute_dtype=jnp.float32))
    assert o1_f32.shape == ref1.shape == (N, Cout, (L - 1) // stride + 1)
    assert jnp.allclose(o1_f32, ref1, atol=1e-4, rtol=1e-4), \
        f"case1 f32 max abs err {jnp.max(jnp.abs(o1_f32 - ref1))}"
    o1_bf = jax.block_until_ready(basic_block_forward(x, p1, stride))
    assert jnp.allclose(o1_bf, ref1, atol=5e-2, rtol=5e-2), \
        f"case1 bf16 max abs err {jnp.max(jnp.abs(o1_bf - ref1))}"

    # --- case 2: identity shortcut (stride=1, Cin == Cout=8) -> in-kernel conv1 taps ---
    x2 = jax.random.normal(kx2, (2, 8, 16), jnp.float32)
    p2 = init_params(kp2, 8, 8, downsample=False)
    ref2 = basic_block_reference(x2, p2, 1)

    o2_f32 = jax.block_until_ready(
        basic_block_forward(x2, p2, 1, compute_dtype=jnp.float32))
    assert o2_f32.shape == ref2.shape == (2, 8, 16)
    assert jnp.allclose(o2_f32, ref2, atol=1e-4, rtol=1e-4), \
        f"case2 f32 max abs err {jnp.max(jnp.abs(o2_f32 - ref2))}"
    o2_bf = jax.block_until_ready(basic_block_forward(x2, p2, 1))
    assert jnp.allclose(o2_bf, ref2, atol=5e-2, rtol=5e-2), \
        f"case2 bf16 max abs err {jnp.max(jnp.abs(o2_bf - ref2))}"

    # --- case 3: stride=1, Cin=Cout=16 -> fused bf16 tap-concat path (aligned packing) ---
    x3 = jax.random.normal(kx3, (2, 16, 16), jnp.float32)
    p3 = init_params(kp3, 16, 16, downsample=False)
    ref3 = basic_block_reference(x3, p3, 1)
    o3 = jax.block_until_ready(basic_block_forward(x3, p3, 1))
    assert jnp.allclose(o3, ref3, atol=5e-2, rtol=5e-2), \
        f"case3 bf16 max abs err {jnp.max(jnp.abs(o3 - ref3))}"

    # --- case 4: forced split-dot taps (what Cout>=256 would auto-select), exact in f32 ---
    o4 = jax.block_until_ready(
        basic_block_forward(x2, p2, 1, compute_dtype=jnp.float32, split_taps=True))
    assert jnp.allclose(o4, ref2, atol=1e-4, rtol=1e-4), \
        f"case4 split f32 max abs err {jnp.max(jnp.abs(o4 - ref2))}"

    print("KERNEL_OK")
</pallas_src>

<mosaic_0001>
module attributes {stable_mosaic.version = 11 : i64} {
  func.func @kernel(%arg0: i32, %arg1: memref<12x128xf32, #tpu.memory_space<vmem>>, %arg2: memref<1x128xf32, #tpu.memory_space<vmem>>, %arg3: memref<1x128xf32, #tpu.memory_space<vmem>>, %arg4: memref<8x12xf32, #tpu.memory_space<vmem>>, %arg5: memref<8x1xf32, #tpu.memory_space<vmem>>, %arg6: memref<8x24xf32, #tpu.memory_space<vmem>>, %arg7: memref<8x1xf32, #tpu.memory_space<vmem>>, %arg8: memref<8x4xf32, #tpu.memory_space<vmem>>, %arg9: memref<8x128xf32, #tpu.memory_space<vmem>>) attributes {dimension_semantics = [#tpu.dimension_semantics<parallel>], iteration_bounds = array<i64: 1>, scalar_prefetch = 0 : i64, scratch_operands = 0 : i64, tpu.core_type = #tpu.core_type<tc>, window_params = [{transform_indices = @transform_0, window_bounds = array<i64: 12, 128>}, {pipeline_mode = #tpu.pipeline_mode<synchronous>, transform_indices = @transform_1, window_bounds = array<i64: 1, 128>}, {pipeline_mode = #tpu.pipeline_mode<synchronous>, transform_indices = @transform_2, window_bounds = array<i64: 1, 128>}, {pipeline_mode = #tpu.pipeline_mode<synchronous>, transform_indices = @transform_3, window_bounds = array<i64: 8, 12>}, {pipeline_mode = #tpu.pipeline_mode<synchronous>, transform_indices = @transform_4, window_bounds = array<i64: 8, 1>}, {pipeline_mode = #tpu.pipeline_mode<synchronous>, transform_indices = @transform_5, window_bounds = array<i64: 8, 24>}, {pipeline_mode = #tpu.pipeline_mode<synchronous>, transform_indices = @transform_6, window_bounds = array<i64: 8, 1>}, {pipeline_mode = #tpu.pipeline_mode<synchronous>, transform_indices = @transform_7, window_bounds = array<i64: 8, 4>}, {transform_indices = @transform_8, window_bounds = array<i64: 8, 128>}]} {
    %c0 = arith.constant 0 : index
    %c0_0 = arith.constant 0 : index
    %0 = vector.load %arg2[%c0, %c0_0] : memref<1x128xf32, #tpu.memory_space<vmem>>, vector<1x128xf32>
    %c0_1 = arith.constant 0 : index
    %c0_2 = arith.constant 0 : index
    %1 = vector.load %arg3[%c0_1, %c0_2] : memref<1x128xf32, #tpu.memory_space<vmem>>, vector<1x128xf32>
    %c0_3 = arith.constant 0 : index
    %c0_4 = arith.constant 0 : index
    %2 = vector.load %arg4[%c0_3, %c0_4] : memref<8x12xf32, #tpu.memory_space<vmem>>, vector<8x12xf32>
    %c0_5 = arith.constant 0 : index
    %c0_6 = arith.constant 0 : index
    %3 = vector.load %arg1[%c0_5, %c0_6] : memref<12x128xf32, #tpu.memory_space<vmem>>, vector<12x128xf32>
    %cst = arith.constant dense<0.000000e+00> : vector<8x128xf32>
    %4 = tpu.matmul %2, %3, %cst {dimension_numbers = #tpu.dot_dimension_numbers<[1], [0], [0], [1], [0, 0, 1, 1], [], []>} : vector<8x12xf32>, vector<12x128xf32>, vector<8x128xf32> -> vector<8x128xf32>
    %c0_7 = arith.constant 0 : index
    %c0_8 = arith.constant 0 : index
    %5 = vector.load %arg5[%c0_7, %c0_8] : memref<8x1xf32, #tpu.memory_space<vmem>>, vector<8x1xf32>
    %6 = vector.broadcast %5 : vector<8x1xf32> to vector<8x128xf32>
    %7 = arith.addf %4, %6 : vector<8x128xf32>
    %cst_9 = arith.constant 0.000000e+00 : f32
    %8 = vector.broadcast %cst_9 : f32 to vector<8x128xf32>
    %9 = arith.maximumf %7, %8 : vector<8x128xf32>
    %c1_i32 = arith.constant 1 : i32
    %10 = tpu.dynamic_rotate %9 by %c1_i32 dim 1 : vector<8x128xf32>, i32 -> vector<8x128xf32>
    %11 = vector.broadcast %0 : vector<1x128xf32> to vector<8x128xf32>
    %12 = arith.mulf %10, %11 : vector<8x128xf32>
    %c127_i32 = arith.constant 127 : i32
    %13 = tpu.dynamic_rotate %9 by %c127_i32 dim 1 : vector<8x128xf32>, i32 -> vector<8x128xf32>
    %14 = vector.broadcast %1 : vector<1x128xf32> to vector<8x128xf32>
    %15 = arith.mulf %13, %14 : vector<8x128xf32>
    %16 = tpu.concatenate %12, %9, %15 in 0 : vector<8x128xf32>, vector<8x128xf32>, vector<8x128xf32> -> vector<24x128xf32>
    %c0_10 = arith.constant 0 : index
    %c0_11 = arith.constant 0 : index
    %17 = vector.load %arg6[%c0_10, %c0_11] : memref<8x24xf32, #tpu.memory_space<vmem>>, vector<8x24xf32>
    %cst_12 = arith.constant dense<0.000000e+00> : vector<8x128xf32>
    %18 = tpu.matmul %17, %16, %cst_12 {dimension_numbers = #tpu.dot_dimension_numbers<[1], [0], [0], [1], [0, 0, 1, 1], [], []>} : vector<8x24xf32>, vector<24x128xf32>, vector<8x128xf32> -> vector<8x128xf32>
    %c0_13 = arith.constant 0 : index
    %c0_14 = arith.constant 0 : index
    %19 = vector.load %arg7[%c0_13, %c0_14] : memref<8x1xf32, #tpu.memory_space<vmem>>, vector<8x1xf32>
    %20 = vector.broadcast %19 : vector<8x1xf32> to vector<8x128xf32>
    %21 = arith.addf %18, %20 : vector<8x128xf32>
    %c4 = arith.constant 4 : index
    %c0_15 = arith.constant 0 : index
    %22 = vector.load %arg1[%c4, %c0_15] : memref<12x128xf32, #tpu.memory_space<vmem>>, vector<4x128xf32>
    %c0_16 = arith.constant 0 : index
    %c0_17 = arith.constant 0 : index
    %23 = vector.load %arg8[%c0_16, %c0_17] : memref<8x4xf32, #tpu.memory_space<vmem>>, vector<8x4xf32>
    %cst_18 = arith.constant dense<0.000000e+00> : vector<8x128xf32>
    %24 = tpu.matmul %23, %22, %cst_18 {dimension_numbers = #tpu.dot_dimension_numbers<[1], [0], [0], [1], [0, 0, 1, 1], [], []>} : vector<8x4xf32>, vector<4x128xf32>, vector<8x128xf32> -> vector<8x128xf32>
    %25 = arith.addf %21, %24 : vector<8x128xf32>
    %cst_19 = arith.constant 0.000000e+00 : f32
    %26 = vector.broadcast %cst_19 : f32 to vector<8x128xf32>
    %27 = arith.maximumf %25, %26 : vector<8x128xf32>
    %c0_20 = arith.constant 0 : index
    %c0_21 = arith.constant 0 : index
    %28 = vector.load %arg9[%c0_20, %c0_21] : memref<8x128xf32, #tpu.memory_space<vmem>>, vector<8x128xf32>
    tpu.vector_store %arg9[%c0_20, %c0_21], %27 {strides = array<i32>} : memref<8x128xf32, #tpu.memory_space<vmem>>, vector<8x128xf32>,
    return
  }
  func.func @transform_0(%arg0: i32) -> (i32, i32) {
    %c0_i32 = arith.constant 0 : i32
    %c0_i32_0 = arith.constant 0 : i32
    return %c0_i32, %arg0 : i32, i32
  }
  func.func @transform_1(%arg0: i32) -> (i32, i32) {
    %c0_i32 = arith.constant 0 : i32
    %c0_i32_0 = arith.constant 0 : i32
    %c0_i32_1 = arith.constant 0 : i32
    return %c0_i32, %c0_i32_0 : i32, i32
  }
  func.func @transform_2(%arg0: i32) -> (i32, i32) {
    %c0_i32 = arith.constant 0 : i32
    %c0_i32_0 = arith.constant 0 : i32
    %c0_i32_1 = arith.constant 0 : i32
    return %c0_i32, %c0_i32_0 : i32, i32
  }
  func.func @transform_3(%arg0: i32) -> (i32, i32) {
    %c0_i32 = arith.constant 0 : i32
    %c0_i32_0 = arith.constant 0 : i32
    %c0_i32_1 = arith.constant 0 : i32
    return %c0_i32, %c0_i32_0 : i32, i32
  }
  func.func @transform_4(%arg0: i32) -> (i32, i32) {
    %c0_i32 = arith.constant 0 : i32
    %c0_i32_0 = arith.constant 0 : i32
    %c0_i32_1 = arith.constant 0 : i32
    return %c0_i32, %c0_i32_0 : i32, i32
  }
  func.func @transform_5(%arg0: i32) -> (i32, i32) {
    %c0_i32 = arith.constant 0 : i32
    %c0_i32_0 = arith.constant 0 : i32
    %c0_i32_1 = arith.constant 0 : i32
    return %c0_i32, %c0_i32_0 : i32, i32
  }
  func.func @transform_6(%arg0: i32) -> (i32, i32) {
    %c0_i32 = arith.constant 0 : i32
    %c0_i32_0 = arith.constant 0 : i32
    %c0_i32_1 = arith.constant 0 : i32
    return %c0_i32, %c0_i32_0 : i32, i32
  }
  func.func @transform_7(%arg0: i32) -> (i32, i32) {
    %c0_i32 = arith.constant 0 : i32
    %c0_i32_0 = arith.constant 0 : i32
    %c0_i32_1 = arith.constant 0 : i32
    return %c0_i32, %c0_i32_0 : i32, i32
  }
  func.func @transform_8(%arg0: i32) -> (i32, i32) {
    %c0_i32 = arith.constant 0 : i32
    %c0_i32_0 = arith.constant 0 : i32
    return %c0_i32, %arg0 : i32, i32
  }
}

</mosaic_0001>

<bundles_post_ra>
// kernel: tpu_custom_call.1
= control target key start
LH: loop header
LB: loop body
LE: loop exit
PB: predicated region body
PF: predicated region fallthrough
CT: control target
= control target key end

     0   :  { %13 = vsyncpa [#allocation3], 0  ;;  %s543_s0 = inlined_call_operand.vmem [shape: f32[12,128], index: 0, kind: input, shape index: {}]   ;;  %s544_s1 = inlined_call_operand.hbm [shape: f32[1,128], index: 1, kind: input, shape index: {}]   ;;  %s545_s2 = inlined_call_operand.hbm [shape: f32[1,128], index: 2, kind: input, shape index: {}]   ;;  %s546_s3 = inlined_call_operand.vmem [shape: f32[8,12], index: 3, kind: input, shape index: {}]   ;;  %s547_s4 = inlined_call_operand.vmem [shape: f32[8,1], index: 4, kind: input, shape index: {}]   ;;  %s548_s5 = inlined_call_operand.vmem [shape: f32[8,24], index: 5, kind: input, shape index: {}]   ;;  %s549_s6 = inlined_call_operand.vmem [shape: f32[8,1], index: 6, kind: input, shape index: {}]   ;;  %s550_s7 = inlined_call_operand.vmem [shape: f32[8,4], index: 7, kind: input, shape index: {}]   ;;  %s551_s8 = inlined_call_operand.hbm [shape: f32[8,128], index: 8, kind: output, shape index: {}]  }
   0x1   :  { %14 = vsyncpa [#allocation6], 0 }
   0x2   :  { %15 = vsyncpa [#allocation4], 0  ;;  %s454_s27 = smov [#allocation2]   ;;  %s455_s29 = smov [#allocation5]  }
   0x3   :  { %s24_s28 = sshll.u32 %s454_s27, 4  ;;  %s34_s30 = sshll.u32 %s455_s29, 4  ;;  %s25_s28 = int_to_ptr.vmem [resolvable:$true] %s24_s28  ;;  %s35_s30 = int_to_ptr.vmem [resolvable:$true] %s34_s30 }
   0x4   :  { %s396_s9 = scalar_lea.vmem %s25_s28, 16  ;;  %s400_s10 = scalar_lea.vmem %s25_s28, 32 }
   0x5   :  { %p397_p0 = scmp.ne.s32.totalorder %s25_s28, %s396_s9  ;;  %p401_p1 = scmp.lt.s32.totalorder %s25_s28, %s25_s28 }
   0x6   :  { %p402_p2 = scmp.lt.s32.totalorder %s400_s10, %s396_s9 }
   0x8   :  { %p403_p3 = por %p402_p2, %p401_p1 }
   0xa   :  { %p404_p4 = pnand %p403_p3, %p397_p0 }
   0xc   :  { %407 = shalt.err (!%p404_p4)
}
   0xd   :  { %27 = dma.hbm_to_vmem [thread:$0]  %s544_s1, 16, %s25_s28, [#allocation3]  }
   0xe   :  { %s416_s13 = scalar_lea.vmem %s35_s30, 16  ;;  %s420_s14 = scalar_lea.vmem %s35_s30, 32 }
   0xf   :  { %p417_p5 = scmp.ne.s32.totalorder %s35_s30, %s416_s13  ;;  %p421_p6 = scmp.lt.s32.totalorder %s35_s30, %s35_s30 }
  0x10   :  { %p422_p7 = scmp.lt.s32.totalorder %s420_s14, %s416_s13 }
  0x12   :  { %p423_p8 = por %p422_p7, %p421_p6 }
  0x14   :  { %p424_p9 = pnand %p423_p8, %p417_p5 }
  0x16   :  { %427 = shalt.err (!%p424_p9)
}
  0x17   :  { %37 = dma.hbm_to_vmem [thread:$0]  %s545_s2, 16, %s35_s30, [#allocation6]  }
  0x18   :  { %448 = dma.done.wait [#allocation3], 16  }
  0x19   :  { %449 = vsyncadd [#allocation3], 4294967280 }
  0x1a   :  { %450 = dma.done.wait [#allocation6], 16  }
  0x1b   :  { %451 = vsyncadd [#allocation6], 4294967280  ;;  %v456_v0 = vmov 0.0   ;;  %vm457_vm0 = vmmov 0   ;;  %v458_v1 = vmov 0   ;;  %vm69_vm1 = vcmask 1043456  }
  0x1c   :  { %357 = vmatprep.subr.mxu0 %v456_v0  ;;  %361 = vmatprep.mubr.msk.f32.mxu0 %vm457_vm0, %v456_v0  ;;  %v58_v2 = vld [vmem:[%s543_s0 + $0x8] sm:$0xf]  ;;  %v57_v3 = vld [vmem:[%s543_s0] sm:$0xff]  ;;  %vm65_vm2 = vcmask 97280   ;;  %vm245_vm3 = vcmask 31744   ;;  %s460_s26 = smov 127  }
  0x1d   :  { %386 = vset.pattern.permute.xlu0 %v458_v1  ;;  %364 = vmatprep.subr.mxu1 %v456_v0  ;;  %v56_v4 = vld [vmem:[%s546_s3] sm:$0xff]  ;;  %vm169_vm4 = vcmask 195584  }
  0x1e   :  { %370 = vmatprep.mubr.msk.f32.mxu1 %vm457_vm0, %v456_v0  ;;  %387 = vset.pattern.permute.xlu1 %v458_v1  ;;  %v59_v5 = vld [vmem:[%s547_s4] sm:$0xff]  ;;  %s459_s4 = smov 1  }
  0x1f   :  { %358 = vmatpush3.msk.msra.mxu0 %vm69_vm1, %v58_v2  ;;  %62 = vperm.xlu0 %386, %v59_v5   ;;  %v243_v6 = vld [vmem:[%s543_s0 + $0x4] sm:$0xf]  ;;  %v344_v14 = vld [vmem:[#allocation5] ss:$0 sm:$0xff]  ;;  %v343_v18 = vld [vmem:[#allocation2] ss:$0 sm:$0xff] }
  0x20   :  { %359 = vmatprep.subr.mxu0 %v456_v0  ;;  %v244_v8 = vld [vmem:[%s550_s7] sm:$0xff] }
  0x21   :  { %360 = vmatpush3.msra.mxu0 %v57_v3  ;;  %v163_v13 = vld [vmem:[%s549_s6] sm:$0xff]  ;;  %s461_s6 = smov [#allocation7]  }
  0x22   :  { %362 = vmatmul.mubr.msk.f32.vlgmr.msra.gmra.mxu0 %vm65_vm2, %v56_v4  ;;  %373 = vmatprep.subr.mxu0 %v456_v0  ;;  %v162_v20 = vld [vmem:[%s548_s5] sm:$0xff]  ;;  %s331_s29 = sshll.u32 %s461_s6, 4  ;;  %s332_s29 = int_to_ptr.vmem [resolvable:$true] %s331_s29 }
  0x23   :  { %375 = vmatprep.mubr.msk.f32.mxu0 %vm457_vm0, %v456_v0  ;;  %374 = vmatpush3.msk.msra.mxu0 %vm69_vm1, %v243_v6  ;;  %s428_s30 = scalar_lea.vmem %s332_s29, 128  ;;  %p433_p11 = scmp.lt.s32.totalorder %s332_s29, %s332_s29 }
  0x24   :  { %p429_p10 = scmp.ne.s32.totalorder %s332_s29, %s428_s30  ;;  %p434_p12 = scmp.lt.s32.totalorder %s428_s30, %s428_s30 }
  0x26   :  { %376 = vmatmul.mubr.msk.f32.vlgmr.msra.gmra.mxu0 %vm245_vm3, %v244_v8  ;;  %p435_p13 = por %p434_p12, %p433_p11 }
  0x28   :  { %p436_p0 = pnand %p435_p13, %p429_p10 }
  0x9a   :  { %v63_v7 = vpop.permute.xlu0 %62 }
  0xe2   :  { %v139_v9 = vpop.f32.mrf.mxu0 }
  0xe3   :  { %v140_v10 = vadd.f32 %v139_v9, %v63_v7 }
  0xe4   :  { %v363_v11 = vpop.f32.mrf.mxu0 }
  0xe5   :  { %v143_v12 = vmax.f32 %v140_v10, 0.0 }
  0xe6   :  { %v318_v21 = vpop.f32.mrf.mxu0 }
  0xe7   :  { %144 = vrot.lane.b32.xlu1 %v143_v12, %s459_s4  ;;  %153 = vrot.lane.b32.xlu0 %v143_v12, %s460_s26 }
  0xe8   :  { %v377_v22 = vpop.f32.mrf.mxu0 }
  0xeb   :  { %166 = vperm.xlu1 %387, %v163_v13  }
 0x159   :  { %v154_v15 = vpop.permute.xlu0 %153  ;;  %v145_v17 = vpop.permute.xlu1 %144 }
 0x15a   :  { %v161_v16 = vmul.f32 %v344_v14, %v154_v15  ;;  %v152_v19 = vmul.f32 %v343_v18, %v145_v17 }
 0x15c   :  { %365 = vmatpush3.msra.mxu1 %v161_v16 }
 0x15d   :  { %366 = vmatprep.subr.mxu1 %v456_v0 }
 0x15e   :  { %367 = vmatpush3.msra.mxu1 %v143_v12 }
 0x15f   :  { %368 = vmatprep.subr.mxu1 %v456_v0 }
 0x160   :  { %369 = vmatpush3.msra.mxu1 %v152_v19 }
 0x161   :  { %371 = vmatmul.mubr.msk.f32.vlgmr.msra.gmra.mxu1 %vm169_vm4, %v162_v20 }
 0x166   :  { %v167_v23 = vpop.permute.xlu1 %166 }
 0x221   :  { %v239_v24 = vpop.f32.mrf.mxu1 }
 0x222   :  { %v240_v25 = vadd.f32 %v239_v24, %v167_v23 }
 0x223   :  { %v372_v26 = vpop.f32.mrf.mxu1 }
 0x224   :  { %v322_v27 = vadd.f32 %v318_v21, %v240_v25 }
 0x226   :  { %v323_v28 = vmax.f32 %v322_v27, 0.0 }
 0x228   :  { %324 = vst [vmem:[#allocation7] sm:$0xff] %v323_v28 }
 0x229   :  { %439 = shalt.err (!%p436_p0)
}
 0x22a   :  { %334 = dma.vmem_to_hbm [thread:$0]  %s332_s29, 128, %s551_s8, [#allocation4]  }
 0x22b   :  { %452 = dma.done.wait [#allocation4], 128  }
 0x22c   :  { %453 = vsyncadd [#allocation4], 4294967168 }
 0x22d   :  { %338 = vsyncpa [#allocation3], 1 }
 0x22e   :  { %339 = vsyncpa [#allocation6], 1 }
 0x22f   :  { %340 = vsyncpa [#allocation4], 1 }

</bundles_post_ra>
